<compile_context>
chip_gen: v6e
topology: v6e:2x2x1
jax: 0.10.0
libtpu: 0.0.40
codegen_flags: <defaults>
</compile_context>

<pallas_src>
import functools

import jax
import jax.numpy as jnp
from jax.experimental import pallas as pl
from jax.experimental.pallas import tpu as pltpu


def _round_up(x, m):
    return ((x + m - 1) // m) * m


def actor_critic_kernel(x_ref, w1_ref, b1_ref, w2_ref, b2_ref, out_ref, *, a):
    """Fused actor+critic forward for one batch tile.

    x_ref:   [TM, D]   input states
    w1_ref:  [D, HC]   columns = [critic_w1 | actor_w1 | zero-pad], HC = round_up(2H, 128)
    b1_ref:  [1, HC]
    w2_ref:  [HC, W]   block-diagonal: lane 0 = critic head, lanes 1..A = actor head
    b2_ref:  [1, W]
    out_ref: [TM, W]   lane 0 = value, lanes 1..A = softmax probs, remaining lanes 0
    """
    x = x_ref[...]                                                      # [TM, D] f32

    # ---- fused layer 1: one MXU push + one tanh covers both heads ----
    hidden = jnp.tanh(
        jnp.dot(x, w1_ref[...], preferred_element_type=jnp.float32) + b1_ref[...]
    )                                                                   # [TM, HC]; pad cols -> tanh(0)=0

    # ---- fused layer 2 (block-diagonal): one MXU push -> [TM, W] ----
    y = jnp.dot(hidden, w2_ref[...], preferred_element_type=jnp.float32) + b2_ref[...]

    # ---- masked softmax over action lanes 1..A (lane 0 is the critic value) ----
    lane = jax.lax.broadcasted_iota(jnp.int32, y.shape, 1)
    action = (lane >= 1) & (lane < 1 + a)                               # requires a >= 1
    masked = jnp.where(action, y, -jnp.inf)
    m = jnp.max(masked, axis=1, keepdims=True)                          # [TM, 1]
    e = jnp.exp(masked - m)                                             # zeros on non-action lanes
    denom = jnp.sum(e, axis=1, keepdims=True)                           # [TM, 1]
    r = pl.reciprocal(denom, approx=True)
    r = r * (2.0 - denom * r)                                           # one Newton step: ~1e-6 rel err
    probs = e * r                                                       # [TM, W]

    # lane 0 keeps the raw critic value; other lanes carry probs (0 on padding)
    out_ref[...] = jnp.where(lane == 0, y, probs)


def pack_params(params):
    """One-time packing of the 8 Linear parameters into 4 tile-aligned slabs.

    Call this once per parameter update (outside the per-step hot path) and pass
    the result to `actor_critic_forward`.
    """
    D, H = params["cw1"].shape
    A = params["aw2"].shape[1]
    assert A >= 1, "softmax needs at least one action lane"
    HC = _round_up(2 * H, 128)          # lane-dense hidden width
    W = _round_up(1 + A, 8)             # narrow output slab: value + probs (+ pad)

    w1 = jnp.zeros((D, HC), jnp.float32)
    w1 = w1.at[:, :H].set(params["cw1"])
    w1 = w1.at[:, H:2 * H].set(params["aw1"])
    b1 = jnp.zeros((1, HC), jnp.float32)
    b1 = b1.at[:, :H].set(params["cb1"])
    b1 = b1.at[:, H:2 * H].set(params["ab1"])

    w2 = jnp.zeros((HC, W), jnp.float32)
    w2 = w2.at[:H, 0:1].set(params["cw2"])                              # critic -> lane 0
    w2 = w2.at[H:2 * H, 1:1 + A].set(params["aw2"])                     # actor  -> lanes 1..A
    b2 = jnp.zeros((1, W), jnp.float32)
    b2 = b2.at[:, 0:1].set(params["cb2"])
    b2 = b2.at[:, 1:1 + A].set(params["ab2"])

    return dict(w1=w1, b1=b1, w2=w2, b2=b2)


@functools.partial(jax.jit, static_argnames=("num_actions", "block_b"))
def actor_critic_forward(state, packed, *, num_actions, block_b=1024):
    """state: [B, D] float32. packed: output of pack_params.

    Returns (value [B], probs [B, A]) matching (critic(state), actor(state)).
    """
    B, D = state.shape
    A = num_actions
    w1, b1, w2, b2 = packed["w1"], packed["b1"], packed["w2"], packed["b2"]
    HC = w1.shape[1]
    W = w2.shape[1]
    assert 1 + A <= W

    # --- adaptive batch tiling: near-equal tiles <= block_b, minimal padding ---
    B8 = _round_up(max(B, 1), 8)
    n_tiles = pl.cdiv(B8, block_b)
    if B8 >= 256 and n_tiles < 2:
        n_tiles = 2                      # keep both v7x TensorCores busy when B is large
    tm = _round_up(pl.cdiv(B8, n_tiles), 8)
    Bp = tm * n_tiles
    x = state if Bp == B else jnp.pad(state, ((0, Bp - B), (0, 0)))

    kernel = functools.partial(actor_critic_kernel, a=A)

    out = pl.pallas_call(
        kernel,
        out_shape=jax.ShapeDtypeStruct((Bp, W), jnp.float32),
        grid=(n_tiles,),
        in_specs=[
            pl.BlockSpec((tm, D), lambda i: (i, 0)),                    # state tile
            pl.BlockSpec((D, HC), lambda i: (0, 0)),                    # layer-1 weights (resident)
            pl.BlockSpec((1, HC), lambda i: (0, 0)),                    # layer-1 bias   (resident)
            pl.BlockSpec((HC, W), lambda i: (0, 0)),                    # layer-2 weights (resident)
            pl.BlockSpec((1, W), lambda i: (0, 0)),                     # layer-2 bias   (resident)
        ],
        out_specs=pl.BlockSpec((tm, W), lambda i: (i, 0)),
        compiler_params=pltpu.CompilerParams(
            dimension_semantics=("parallel",)),                         # megacore on v7x
    )(x, w1, b1, w2, b2)

    value = out[:B, 0]
    probs = out[:B, 1:1 + A]
    return value, probs


def init_params(key, num_inputs, hidden_size, num_actions):
    """Deterministic PyTorch-Linear-style init: U(-1/sqrt(fan_in), 1/sqrt(fan_in))."""
    def linear(k, fan_in, fan_out):
        kw, kb = jax.random.split(k)
        bound = 1.0 / jnp.sqrt(jnp.float32(fan_in))
        w = jax.random.uniform(kw, (fan_in, fan_out), jnp.float32, -bound, bound)
        b = jax.random.uniform(kb, (1, fan_out), jnp.float32, -bound, bound)
        return w, b

    k1, k2, k3, k4 = jax.random.split(key, 4)
    cw1, cb1 = linear(k1, num_inputs, hidden_size)
    cw2, cb2 = linear(k2, hidden_size, 1)
    aw1, ab1 = linear(k3, num_inputs, hidden_size)
    aw2, ab2 = linear(k4, hidden_size, num_actions)
    return dict(cw1=cw1, cb1=cb1, cw2=cw2, cb2=cb2,
                aw1=aw1, ab1=ab1, aw2=aw2, ab2=ab2)


def reference_forward(state, p):
    """Pure-JAX reference mirroring the PyTorch forward."""
    h_c = jnp.tanh(state @ p["cw1"] + p["cb1"])
    value = (h_c @ p["cw2"] + p["cb2"])[:, 0]
    h_a = jnp.tanh(state @ p["aw1"] + p["ab1"])
    h = h_a @ p["aw2"] + p["ab2"]
    h = h - jnp.max(h, axis=1, keepdims=True)
    logp = h - jnp.log(jnp.sum(jnp.exp(h), axis=1, keepdims=True))
    return value, jnp.exp(logp)


if __name__ == "__main__":
    # Shapes consistent with the module: env.observation_space.shape[0] = 4,
    # hidden_size = 40, num_actions = 6, batch = 2.
    B, D, H, A = 2, 4, 40, 6

    key = jax.random.PRNGKey(0)
    k_params, k_state = jax.random.split(key)
    params = init_params(k_params, D, H, A)
    state = jax.random.normal(k_state, (B, D), jnp.float32)

    packed = pack_params(params)                       # one-time packing (hoisted out of hot path)
    value, probs = actor_critic_forward(state, packed, num_actions=A)
    value = jax.block_until_ready(value)
    probs = jax.block_until_ready(probs)

    # sanity check against pure-JAX reference
    ref_value, ref_probs = reference_forward(state, params)
    assert value.shape == (B,) and probs.shape == (B, A)
    assert jnp.allclose(value, ref_value, atol=1e-5, rtol=1e-5)
    assert jnp.allclose(probs, ref_probs, atol=1e-5, rtol=1e-5)
    assert jnp.allclose(jnp.sum(probs, axis=1), 1.0, atol=1e-4)

    print("KERNEL_OK")
</pallas_src>

<mosaic_0001>
module attributes {stable_mosaic.version = 11 : i64} {
  func.func @actor_critic_kernel(%arg0: i32, %arg1: memref<8x4xf32, #tpu.memory_space<vmem>>, %arg2: memref<4x128xf32, #tpu.memory_space<vmem>>, %arg3: memref<1x128xf32, #tpu.memory_space<vmem>>, %arg4: memref<128x8xf32, #tpu.memory_space<vmem>>, %arg5: memref<1x8xf32, #tpu.memory_space<vmem>>, %arg6: memref<8x8xf32, #tpu.memory_space<vmem>>) attributes {dimension_semantics = [#tpu.dimension_semantics<parallel>], iteration_bounds = array<i64: 1>, scalar_prefetch = 0 : i64, scratch_operands = 0 : i64, tpu.core_type = #tpu.core_type<tc>, window_params = [{transform_indices = @transform_0, window_bounds = array<i64: 8, 4>}, {pipeline_mode = #tpu.pipeline_mode<synchronous>, transform_indices = @transform_1, window_bounds = array<i64: 4, 128>}, {pipeline_mode = #tpu.pipeline_mode<synchronous>, transform_indices = @transform_2, window_bounds = array<i64: 1, 128>}, {pipeline_mode = #tpu.pipeline_mode<synchronous>, transform_indices = @transform_3, window_bounds = array<i64: 128, 8>}, {pipeline_mode = #tpu.pipeline_mode<synchronous>, transform_indices = @transform_4, window_bounds = array<i64: 1, 8>}, {transform_indices = @transform_5, window_bounds = array<i64: 8, 8>}]} {
    %c0 = arith.constant 0 : index
    %c0_0 = arith.constant 0 : index
    %0 = vector.load %arg1[%c0, %c0_0] : memref<8x4xf32, #tpu.memory_space<vmem>>, vector<8x4xf32>
    %c0_1 = arith.constant 0 : index
    %c0_2 = arith.constant 0 : index
    %1 = vector.load %arg2[%c0_1, %c0_2] : memref<4x128xf32, #tpu.memory_space<vmem>>, vector<4x128xf32>
    %cst = arith.constant dense<0.000000e+00> : vector<8x128xf32>
    %2 = tpu.matmul %0, %1, %cst {dimension_numbers = #tpu.dot_dimension_numbers<[1], [0], [0], [1], [0, 0, 1, 1], [], []>} : vector<8x4xf32>, vector<4x128xf32>, vector<8x128xf32> -> vector<8x128xf32>
    %c0_3 = arith.constant 0 : index
    %c0_4 = arith.constant 0 : index
    %3 = vector.load %arg3[%c0_3, %c0_4] : memref<1x128xf32, #tpu.memory_space<vmem>>, vector<1x128xf32>
    %4 = vector.broadcast %3 : vector<1x128xf32> to vector<8x128xf32>
    %5 = arith.addf %2, %4 : vector<8x128xf32>
    %6 = math.tanh %5 : vector<8x128xf32>
    %c0_5 = arith.constant 0 : index
    %c0_6 = arith.constant 0 : index
    %7 = vector.load %arg4[%c0_5, %c0_6] : memref<128x8xf32, #tpu.memory_space<vmem>>, vector<128x8xf32>
    %cst_7 = arith.constant dense<0.000000e+00> : vector<8x8xf32>
    %8 = tpu.matmul %6, %7, %cst_7 {dimension_numbers = #tpu.dot_dimension_numbers<[1], [0], [0], [1], [0, 0, 1, 1], [], []>} : vector<8x128xf32>, vector<128x8xf32>, vector<8x8xf32> -> vector<8x8xf32>
    %c0_8 = arith.constant 0 : index
    %c0_9 = arith.constant 0 : index
    %9 = vector.load %arg5[%c0_8, %c0_9] : memref<1x8xf32, #tpu.memory_space<vmem>>, vector<1x8xf32>
    %10 = vector.broadcast %9 : vector<1x8xf32> to vector<8x8xf32>
    %11 = arith.addf %8, %10 : vector<8x8xf32>
    %12 = tpu.iota {dimensions = array<i32: 1>} : vector<8x8xi32>
    %c1_i32 = arith.constant 1 : i32
    %13 = vector.broadcast %c1_i32 : i32 to vector<8x8xi32>
    %14 = arith.cmpi sge, %12, %13 : vector<8x8xi32>
    %c7_i32 = arith.constant 7 : i32
    %15 = vector.broadcast %c7_i32 : i32 to vector<8x8xi32>
    %16 = arith.cmpi slt, %12, %15 : vector<8x8xi32>
    %17 = arith.andi %14, %16 : vector<8x8xi1>
    %cst_10 = arith.constant 0xFF800000 : f32
    %18 = vector.broadcast %cst_10 : f32 to vector<8x8xf32>
    %19 = arith.select %17, %11, %18 : vector<8x8xi1>, vector<8x8xf32>
    %cst_11 = arith.constant dense<0xFF800000> : vector<8xf32>
    %20 = vector.multi_reduction <maximumf>, %19, %cst_11 [1] : vector<8x8xf32> to vector<8xf32>
    %21 = vector.shape_cast %20 : vector<8xf32> to vector<8x1xf32>
    %22 = vector.broadcast %21 : vector<8x1xf32> to vector<8x8xf32>
    %23 = arith.subf %19, %22 : vector<8x8xf32>
    %24 = math.exp %23 : vector<8x8xf32>
    %cst_12 = arith.constant dense<0.000000e+00> : vector<8xf32>
    %25 = vector.multi_reduction <add>, %24, %cst_12 [1] : vector<8x8xf32> to vector<8xf32>
    %26 = vector.shape_cast %25 : vector<8xf32> to vector<8x1xf32>
    %27 = tpu.reciprocal %26 {approx = true} : vector<8x1xf32> -> vector<8x1xf32>
    %28 = arith.mulf %26, %27 : vector<8x1xf32>
    %cst_13 = arith.constant 2.000000e+00 : f32
    %29 = vector.broadcast %cst_13 : f32 to vector<8x1xf32>
    %30 = arith.subf %29, %28 : vector<8x1xf32>
    %31 = arith.mulf %27, %30 : vector<8x1xf32>
    %32 = vector.broadcast %31 : vector<8x1xf32> to vector<8x8xf32>
    %33 = arith.mulf %24, %32 : vector<8x8xf32>
    %c0_i32 = arith.constant 0 : i32
    %34 = vector.broadcast %c0_i32 : i32 to vector<8x8xi32>
    %35 = arith.cmpi eq, %12, %34 : vector<8x8xi32>
    %36 = arith.select %35, %11, %33 : vector<8x8xi1>, vector<8x8xf32>
    %c0_14 = arith.constant 0 : index
    %c0_15 = arith.constant 0 : index
    %37 = vector.load %arg6[%c0_14, %c0_15] : memref<8x8xf32, #tpu.memory_space<vmem>>, vector<8x8xf32>
    tpu.vector_store %arg6[%c0_14, %c0_15], %36 {strides = array<i32>} : memref<8x8xf32, #tpu.memory_space<vmem>>, vector<8x8xf32>,
    return
  }
  func.func @transform_0(%arg0: i32) -> (i32, i32) {
    %c0_i32 = arith.constant 0 : i32
    %c0_i32_0 = arith.constant 0 : i32
    return %arg0, %c0_i32 : i32, i32
  }
  func.func @transform_1(%arg0: i32) -> (i32, i32) {
    %c0_i32 = arith.constant 0 : i32
    %c0_i32_0 = arith.constant 0 : i32
    %c0_i32_1 = arith.constant 0 : i32
    return %c0_i32, %c0_i32_0 : i32, i32
  }
  func.func @transform_2(%arg0: i32) -> (i32, i32) {
    %c0_i32 = arith.constant 0 : i32
    %c0_i32_0 = arith.constant 0 : i32
    %c0_i32_1 = arith.constant 0 : i32
    return %c0_i32, %c0_i32_0 : i32, i32
  }
  func.func @transform_3(%arg0: i32) -> (i32, i32) {
    %c0_i32 = arith.constant 0 : i32
    %c0_i32_0 = arith.constant 0 : i32
    %c0_i32_1 = arith.constant 0 : i32
    return %c0_i32, %c0_i32_0 : i32, i32
  }
  func.func @transform_4(%arg0: i32) -> (i32, i32) {
    %c0_i32 = arith.constant 0 : i32
    %c0_i32_0 = arith.constant 0 : i32
    %c0_i32_1 = arith.constant 0 : i32
    return %c0_i32, %c0_i32_0 : i32, i32
  }
  func.func @transform_5(%arg0: i32) -> (i32, i32) {
    %c0_i32 = arith.constant 0 : i32
    %c0_i32_0 = arith.constant 0 : i32
    return %arg0, %c0_i32 : i32, i32
  }
}

</mosaic_0001>

<bundles_post_ra>
// kernel: actor_critic_forward.1
= control target key start
LH: loop header
LB: loop body
LE: loop exit
PB: predicated region body
PF: predicated region fallthrough
CT: control target
= control target key end

     0   :  { %vm33_vm0 = vcmask 1043456   ;;  %vm29_vm1 = vcmask 31744   ;;  %v300_v0 = vmov 0.0   ;;  %vm301_vm2 = vmmov 0   ;;  %s398_s1 = inlined_call_operand.vmem [shape: f32[4,128], index: 1, kind: input, shape index: {}]   ;;  %s399_s0 = inlined_call_operand.vmem [shape: f32[8,4], index: 0, kind: input, shape index: {}]   ;;  %s400_s3 = inlined_call_operand.vmem [shape: f32[128,8], index: 3, kind: input, shape index: {}]   ;;  %s401_s2 = inlined_call_operand.vmem [shape: f32[1,128], index: 2, kind: input, shape index: {}]   ;;  %s402_s4 = inlined_call_operand.vmem [shape: f32[1,8], index: 4, kind: input, shape index: {}]   ;;  %s403_s5 = inlined_call_operand.vmem [shape: f32[8,8], index: 5, kind: output, shape index: {}]  }
   0x1   :  { %252 = vmatprep.subr.mxu0 %v300_v0  ;;  %v21_v1 = vld [vmem:[%s398_s1] sm:$0xf]  ;;  %254 = vmatprep.mubr.msk.f32.mxu0 %vm301_vm2, %v300_v0  ;;  %v123_v3 = vld [vmem:[%s400_s3 + $0x78] sm:$0xff]  ;;  %v122_v4 = vld [vmem:[%s400_s3 + $0x70] sm:$0xff]  ;;  %v201_v24 = vlaneseq  ;;  %vm207_vm6 = vcmask 64512  }
   0x2   :  { %v20_v2 = vld [vmem:[%s399_s0] sm:$0xff]  ;;  %253 = vmatpush3.msk.msra.mxu0 %vm33_vm0, %v21_v1  ;;  %257 = vmatprep.subr.mxu1 %v300_v0  ;;  %v121_v5 = vld [vmem:[%s400_s3 + $0x68] sm:$0xff]  ;;  %v119_v7 = vld [vmem:[%s400_s3 + $0x58] sm:$0xff] }
   0x3   :  { %255 = vmatmul.mubr.msk.f32.vlgmr.msra.gmra.mxu0 %vm29_vm1, %v20_v2  ;;  %258 = vmatpush3.msra.mxu1 %v123_v3  ;;  %v120_v6 = vld [vmem:[%s400_s3 + $0x60] sm:$0xff]  ;;  %v118_v8 = vld [vmem:[%s400_s3 + $0x50] sm:$0xff]  ;;  %v117_v9 = vld [vmem:[%s400_s3 + $0x48] sm:$0xff]  ;;  %v202_v25 = vand.u32 127, %v201_v24 }
   0x4   :  { %259 = vmatprep.subr.mxu1 %v300_v0  ;;  %289 = vmatprep.mubr.msk.f32.mxu1 %vm301_vm2, %v300_v0  ;;  %v116_v10 = vld [vmem:[%s400_s3 + $0x40] sm:$0xff]  ;;  %v115_v11 = vld [vmem:[%s400_s3 + $0x38] sm:$0xff]  ;;  %v114_v12 = vld [vmem:[%s400_s3 + $0x30] sm:$0xff] }
   0x5   :  { %260 = vmatpush3.msra.mxu1 %v122_v4  ;;  %v113_v13 = vld [vmem:[%s400_s3 + $0x28] sm:$0xff]  ;;  %v112_v14 = vld [vmem:[%s400_s3 + $0x20] sm:$0xff]  ;;  %v111_v15 = vld [vmem:[%s400_s3 + $0x18] sm:$0xff]  ;;  %vm203_vm3 = vcmp.ge.s32.totalorder %v202_v25, 1  ;;  %vm204_vm4 = vcmp.lt.s32.totalorder %v202_v25, 7  ;;  %vm222_vm7 = vcmp.eq.s32.totalorder %v202_v25, 0 }
   0x6   :  { %261 = vmatprep.subr.mxu1 %v300_v0  ;;  %v110_v16 = vld [vmem:[%s400_s3 + $0x10] sm:$0xff]  ;;  %v109_v17 = vld [vmem:[%s400_s3 + $0x8] sm:$0xff]  ;;  %v108_v18 = vld [vmem:[%s400_s3] sm:$0xff] }
   0x7   :  { %262 = vmatpush3.msra.mxu1 %v121_v5  ;;  %v229_v19 = vld [vmem:[%s401_s2] ss:$0 sm:$0xff]  ;;  %vm205_vm5 = vmand %vm203_vm3, %vm204_vm4 }
   0x8   :  { %263 = vmatprep.subr.mxu1 %v300_v0  ;;  %v232_v26 = vld [vmem:[%s402_s4] ss:$0 sm:$0xff] }
   0x9   :  { %264 = vmatpush3.msra.mxu1 %v120_v6 }
   0xa   :  { %265 = vmatprep.subr.mxu1 %v300_v0 }
   0xb   :  { %266 = vmatpush3.msra.mxu1 %v119_v7 }
   0xc   :  { %267 = vmatprep.subr.mxu1 %v300_v0 }
   0xd   :  { %268 = vmatpush3.msra.mxu1 %v118_v8 }
   0xe   :  { %269 = vmatprep.subr.mxu1 %v300_v0 }
   0xf   :  { %270 = vmatpush3.msra.mxu1 %v117_v9 }
  0x10   :  { %271 = vmatprep.subr.mxu1 %v300_v0 }
  0x11   :  { %272 = vmatpush3.msra.mxu1 %v116_v10 }
  0x12   :  { %273 = vmatprep.subr.mxu1 %v300_v0 }
  0x13   :  { %274 = vmatpush3.msra.mxu1 %v115_v11 }
  0x14   :  { %275 = vmatprep.subr.mxu1 %v300_v0 }
  0x15   :  { %276 = vmatpush3.msra.mxu1 %v114_v12 }
  0x16   :  { %277 = vmatprep.subr.mxu1 %v300_v0 }
  0x17   :  { %278 = vmatpush3.msra.mxu1 %v113_v13 }
  0x18   :  { %279 = vmatprep.subr.mxu1 %v300_v0 }
  0x19   :  { %280 = vmatpush3.msra.mxu1 %v112_v14 }
  0x1a   :  { %281 = vmatprep.subr.mxu1 %v300_v0 }
  0x1b   :  { %282 = vmatpush3.msra.mxu1 %v111_v15 }
  0x1c   :  { %283 = vmatprep.subr.mxu1 %v300_v0 }
  0x1d   :  { %284 = vmatpush3.msra.mxu1 %v110_v16 }
  0x1e   :  { %285 = vmatprep.subr.mxu1 %v300_v0 }
  0x1f   :  { %286 = vmatpush3.msra.mxu1 %v109_v17 }
  0x20   :  { %287 = vmatprep.subr.mxu1 %v300_v0 }
  0x21   :  { %288 = vmatpush3.msra.mxu1 %v108_v18 }
  0xc3   :  { %v103_v20 = vpop.f32.mrf.mxu0 }
  0xc4   :  { %v104_v21 = vadd.f32 %v229_v19, %v103_v20 }
  0xc5   :  { %v256_v22 = vpop.f32.mrf.mxu0 }
  0xc6   :  { %294 = vtanh.f32 %v104_v21 }
  0xd3   :  { %v295_v23 = vpop.eup %294 }
  0xd4   :  { %290 = vmatmul.mubr.f32.vlgmr.msra.gmra.mxu1 %v295_v23 }
 0x194   :  { %v197_v27 = vpop.f32.mrf.mxu1 }
 0x195   :  { %v198_v28 = vadd.f32 %v232_v26, %v197_v27 }
 0x196   :  { %v291_v29 = vpop.f32.mrf.mxu1 }
 0x197   :  { %v206_v30 = vsel %vm205_vm5, %v198_v28, -inf }
 0x198   :  { %v208_v31 = vsel %vm207_vm6, %v206_v30, -inf }
 0x199   :  { %209 = vmax.xlane.f32.xlu0 %v208_v31 }
 0x222   :  { %v210_v32 = vpop.xlane.xlu0 %209 }
 0x223   :  { %v211_v33 = vsub.f32 %v206_v30, %v210_v32 }
 0x225   :  { %v212_v34 = vmul.f32 1.442695, %v211_v33 }
 0x227   :  { %296 = vpow2.f32 %v212_v34 }
 0x234   :  { %v297_v35 = vpop.eup %296 }
 0x235   :  { %v214_v36 = vsel %vm207_vm6, %v297_v35, 0.0 }
 0x236   :  { %215 = vadd.xlane.f32.xlu0 %v214_v36 }
 0x2bf   :  { %v216_v37 = vpop.xlane.xlu0 %215 }
 0x2c0   :  { %298 = vrcp.f32 %v216_v37 }
 0x2cd   :  { %v299_v38 = vpop.eup %298 }
 0x2ce   :  { %v218_v39 = vmul.f32 %v299_v38, %v216_v37 }
 0x2d0   :  { %v219_v40 = vsub.f32 2.0, %v218_v39 }
 0x2d2   :  { %v220_v41 = vmul.f32 %v299_v38, %v219_v40 }
 0x2d4   :  { %v221_v42 = vmul.f32 %v297_v35, %v220_v41 }
 0x2d6   :  { %v223_v43 = vsel %vm222_vm7, %v198_v28, %v221_v42 }
 0x2d7   :  { %224 = vst.msk [vmem:[%s403_s5] sm:$0xff] %vm207_vm6, %v223_v43 }

</bundles_post_ra>
